<compile_context>
chip_gen: v6e
topology: v6e:2x2x1
jax: 0.10.0
libtpu: 0.0.40
codegen_flags: <defaults>
</compile_context>

<pallas_src>
import functools

import jax
import jax.numpy as jnp
from jax.experimental import pallas as pl
from jax.experimental.pallas import tpu as pltpu


def _mlp_kernel(x_ref, w1_ref, b1_ref, w2t_ref, b2_ref, o_ref):
    """One batch tile: o = LeakyReLU(x @ w1 + b1) @ w2 + b2, stored lane-dense.

    x_ref  : (TM, D_in)  f32   batch tile (double-buffered by BlockSpec)
    w1_ref : (D_in, H)   f32   resident across grid steps
    b1_ref : (1, H)      f32
    w2t_ref: (1, H)      f32   second-layer weight, transposed
    b2_ref : (1, 1)      f32
    o_ref  : (1, TM)     f32   lane-dense output slab
    """
    # Layer 1 on the MXU, f32 accumulation.
    h = jnp.dot(x_ref[...], w1_ref[...], preferred_element_type=jnp.float32)
    h = h + b1_ref[...]                              # (TM, H) + (1, H)
    # LeakyReLU with PyTorch default negative_slope = 0.01.
    h = jnp.where(h >= 0.0, h, 0.01 * h)
    # Layer 2: contract H of (1, H) with H of (TM, H) -> (1, TM).  Result is
    # produced lane-dense, so the store below is a full-width (unmasked) vst
    # except on the ragged last tile, where Pallas masks the OOB lanes.
    o = jnp.einsum("oh,nh->on", w2t_ref[...], h,
                   preferred_element_type=jnp.float32)
    o = o + b2_ref[...]                              # (1, TM) + (1, 1)
    o_ref[...] = o.astype(o_ref.dtype)


@functools.partial(jax.jit, static_argnames=("tm",))
def dnn_forward(x, w1, b1, w2, b2, *, tm=None):
    """Forward pass.  x: (N, D_in) f32; w1: (D_in, H); b1: (H,) or (1, H);
    w2: (H, 1); b2: () / (1,) / (1, 1).  Returns (N, 1) float32.

    `tm` is the batch tile (multiple of 128).  Default (None) picks 8192,
    clamped to a lane-aligned cover of N for small batches.  Per-generation
    guidance for large N: ~4096-8192 (v5e), ~8192 (v6e), ~16384 (v7x, keep
    the grid >= 2 steps, ideally even, so "parallel" splits across both TCs).
    Per-tile working set is only a few MiB even at tm=16384, so no
    vmem_limit_bytes tuning is needed on any generation.
    """
    n, d_in = x.shape
    hdim = w1.shape[1]

    if tm is None:
        tm = 8192
    # Never allocate a block (much) larger than the batch; keep lane-aligned.
    tm = max(128, min(tm, pl.cdiv(n, 128) * 128))
    assert tm % 128 == 0, "tm must be a multiple of 128 for a lane-dense output"

    # All operands stay f32: X is read from HBM exactly once, no extra XLA
    # cast/pad passes over it (they were doubling end-to-end HBM traffic).
    x_f32 = x.astype(jnp.float32)
    w1_2d = jnp.asarray(w1, jnp.float32)
    b1_2d = jnp.asarray(b1, jnp.float32).reshape(1, hdim)
    w2t = jnp.asarray(w2, jnp.float32).reshape(1, hdim)    # (H,1) -> (1,H)
    b2_2d = jnp.asarray(b2, jnp.float32).reshape(1, 1)

    grid = (pl.cdiv(n, tm),)
    out_row = pl.pallas_call(
        _mlp_kernel,
        out_shape=jax.ShapeDtypeStruct((1, n), jnp.float32),
        grid=grid,
        in_specs=[
            pl.BlockSpec((tm, d_in), lambda i: (i, 0)),     # X: batch-tiled
            pl.BlockSpec((d_in, hdim), lambda i: (0, 0)),   # w1: resident
            pl.BlockSpec((1, hdim), lambda i: (0, 0)),      # b1: resident
            pl.BlockSpec((1, hdim), lambda i: (0, 0)),      # w2^T: resident
            pl.BlockSpec((1, 1), lambda i: (0, 0)),         # b2: resident
        ],
        out_specs=pl.BlockSpec((1, tm), lambda i: (0, i)),  # lane-dense slab
        compiler_params=pltpu.CompilerParams(
            dimension_semantics=("parallel",)),
    )(x_f32, w1_2d, b1_2d, w2t, b2_2d)

    # Back to the module's (N, 1) column layout.
    return out_row.reshape(n, 1)


def init_params(key, layers):
    """Parameter init mirroring the module's shapes.

    layers=[L0, L1, ..., Lk]: hidden Linear(L[i], L[i+1]) for i < k-1, then a
    final Linear(L[-2], 1).  Xavier-normal weights (as in the module); small
    random biases (PyTorch's default bias init differs -- irrelevant to the
    kernel, noted for fidelity).
    """
    d_in, hidden = layers[0], layers[1]
    k1, k2, k3, k4 = jax.random.split(key, 4)
    std1 = (2.0 / (d_in + hidden)) ** 0.5
    std2 = (2.0 / (hidden + 1)) ** 0.5
    w1 = jax.random.normal(k1, (d_in, hidden), jnp.float32) * std1
    b1 = jax.random.normal(k3, (1, hidden), jnp.float32) * 0.1
    w2 = jax.random.normal(k2, (hidden, 1), jnp.float32) * std2
    b2 = jax.random.normal(k4, (1, 1), jnp.float32) * 0.1
    return w1, b1, w2, b2


def reference_forward(x, w1, b1, w2, b2):
    """Pure-JAX f32 reference matching the PyTorch module's math (HIGHEST
    precision so the comparison verifies fidelity to the f32 module)."""
    hp = jax.lax.Precision.HIGHEST
    h = jnp.dot(x, jnp.asarray(w1, jnp.float32), precision=hp)
    h = h + jnp.asarray(b1, jnp.float32).reshape(1, -1)
    h = jnp.where(h >= 0.0, h, 0.01 * h)
    o = jnp.dot(h, jnp.asarray(w2, jnp.float32).reshape(-1, 1), precision=hp)
    return o + jnp.asarray(b2, jnp.float32).reshape(1, 1)


if __name__ == "__main__":
    # Layers=[25, 16, 8] -> Linear(25,16) + LeakyReLU + Linear(16,1)
    layers = [25, 16, 8]
    batch = 600          # not a tile multiple: exercises ragged edge + 3-step grid
    tile = 256

    key = jax.random.PRNGKey(0)
    kx, kp = jax.random.split(key)
    x = jax.random.normal(kx, (batch, layers[0]), jnp.float32)
    w1, b1, w2, b2 = init_params(kp, layers)

    out = dnn_forward(x, w1, b1, w2, b2, tm=tile)
    out = jax.block_until_ready(out)

    ref = reference_forward(x, w1, b1, w2, b2)
    assert out.shape == (batch, 1), out.shape
    max_err = jnp.max(jnp.abs(out - ref))
    # Kernel matmuls use default MXU precision (bf16 passes, f32 accumulate),
    # so allow ~1e-2-level deviation from the HIGHEST-precision f32 reference.
    assert jnp.allclose(out, ref, atol=2e-2, rtol=2e-2), (
        f"max abs err {max_err}")

    print("KERNEL_OK")
</pallas_src>

<mosaic_0001>
module attributes {stable_mosaic.version = 11 : i64} {
  func.func @_mlp_kernel(%arg0: i32, %arg1: memref<256x25xf32, #tpu.memory_space<vmem>>, %arg2: memref<25x16xf32, #tpu.memory_space<vmem>>, %arg3: memref<1x16xf32, #tpu.memory_space<vmem>>, %arg4: memref<1x16xf32, #tpu.memory_space<vmem>>, %arg5: memref<1x1xf32, #tpu.memory_space<vmem>>, %arg6: memref<1x256xf32, #tpu.memory_space<vmem>>) attributes {dimension_semantics = [#tpu.dimension_semantics<parallel>], iteration_bounds = array<i64: 3>, scalar_prefetch = 0 : i64, scratch_operands = 0 : i64, tpu.core_type = #tpu.core_type<tc>, window_params = [{transform_indices = @transform_0, window_bounds = array<i64: 256, 25>}, {pipeline_mode = #tpu.pipeline_mode<synchronous>, transform_indices = @transform_1, window_bounds = array<i64: 25, 16>}, {pipeline_mode = #tpu.pipeline_mode<synchronous>, transform_indices = @transform_2, window_bounds = array<i64: 1, 16>}, {pipeline_mode = #tpu.pipeline_mode<synchronous>, transform_indices = @transform_3, window_bounds = array<i64: 1, 16>}, {pipeline_mode = #tpu.pipeline_mode<synchronous>, transform_indices = @transform_4, window_bounds = array<i64: 1, 1>}, {transform_indices = @transform_5, window_bounds = array<i64: 1, 256>}]} {
    %c0 = arith.constant 0 : index
    %c0_0 = arith.constant 0 : index
    %0 = vector.load %arg1[%c0, %c0_0] : memref<256x25xf32, #tpu.memory_space<vmem>>, vector<256x25xf32>
    %c0_1 = arith.constant 0 : index
    %c0_2 = arith.constant 0 : index
    %1 = vector.load %arg2[%c0_1, %c0_2] : memref<25x16xf32, #tpu.memory_space<vmem>>, vector<25x16xf32>
    %cst = arith.constant dense<0.000000e+00> : vector<256x16xf32>
    %2 = tpu.matmul %0, %1, %cst {dimension_numbers = #tpu.dot_dimension_numbers<[1], [0], [0], [1], [0, 0, 1, 1], [], []>} : vector<256x25xf32>, vector<25x16xf32>, vector<256x16xf32> -> vector<256x16xf32>
    %c0_3 = arith.constant 0 : index
    %c0_4 = arith.constant 0 : index
    %3 = vector.load %arg3[%c0_3, %c0_4] : memref<1x16xf32, #tpu.memory_space<vmem>>, vector<1x16xf32>
    %4 = vector.broadcast %3 : vector<1x16xf32> to vector<256x16xf32>
    %5 = arith.addf %2, %4 : vector<256x16xf32>
    %cst_5 = arith.constant 0.000000e+00 : f32
    %6 = vector.broadcast %cst_5 : f32 to vector<256x16xf32>
    %7 = arith.cmpf oge, %5, %6 : vector<256x16xf32>
    %cst_6 = arith.constant 0.00999999977 : f32
    %8 = vector.broadcast %cst_6 : f32 to vector<256x16xf32>
    %9 = arith.mulf %8, %5 : vector<256x16xf32>
    %10 = arith.select %7, %5, %9 : vector<256x16xi1>, vector<256x16xf32>
    %c0_7 = arith.constant 0 : index
    %c0_8 = arith.constant 0 : index
    %11 = vector.load %arg4[%c0_7, %c0_8] : memref<1x16xf32, #tpu.memory_space<vmem>>, vector<1x16xf32>
    "tpu.trace_start"() <{level = 10 : i32, message = "oh,nh->on"}> : () -> ()
    %cst_9 = arith.constant dense<0.000000e+00> : vector<1x256xf32>
    %12 = tpu.matmul %11, %10, %cst_9 {dimension_numbers = #tpu.dot_dimension_numbers<[1], [1], [0], [0], [0, 0, 1, 0], [], []>} : vector<1x16xf32>, vector<256x16xf32>, vector<1x256xf32> -> vector<1x256xf32>
    "tpu.trace_stop"() : () -> ()
    %c0_10 = arith.constant 0 : index
    %c0_11 = arith.constant 0 : index
    %13 = vector.load %arg5[%c0_10, %c0_11] : memref<1x1xf32, #tpu.memory_space<vmem>>, vector<1x1xf32>
    %14 = vector.broadcast %13 : vector<1x1xf32> to vector<1x256xf32>
    %15 = arith.addf %12, %14 : vector<1x256xf32>
    %c0_12 = arith.constant 0 : index
    %c0_13 = arith.constant 0 : index
    %16 = vector.load %arg6[%c0_12, %c0_13] : memref<1x256xf32, #tpu.memory_space<vmem>>, vector<1x256xf32>
    tpu.vector_store %arg6[%c0_12, %c0_13], %15 {strides = array<i32>} : memref<1x256xf32, #tpu.memory_space<vmem>>, vector<1x256xf32>,
    return
  }
  func.func @transform_0(%arg0: i32) -> (i32, i32) {
    %c0_i32 = arith.constant 0 : i32
    %c0_i32_0 = arith.constant 0 : i32
    return %arg0, %c0_i32 : i32, i32
  }
  func.func @transform_1(%arg0: i32) -> (i32, i32) {
    %c0_i32 = arith.constant 0 : i32
    %c0_i32_0 = arith.constant 0 : i32
    %c0_i32_1 = arith.constant 0 : i32
    return %c0_i32, %c0_i32_0 : i32, i32
  }
  func.func @transform_2(%arg0: i32) -> (i32, i32) {
    %c0_i32 = arith.constant 0 : i32
    %c0_i32_0 = arith.constant 0 : i32
    %c0_i32_1 = arith.constant 0 : i32
    return %c0_i32, %c0_i32_0 : i32, i32
  }
  func.func @transform_3(%arg0: i32) -> (i32, i32) {
    %c0_i32 = arith.constant 0 : i32
    %c0_i32_0 = arith.constant 0 : i32
    %c0_i32_1 = arith.constant 0 : i32
    return %c0_i32, %c0_i32_0 : i32, i32
  }
  func.func @transform_4(%arg0: i32) -> (i32, i32) {
    %c0_i32 = arith.constant 0 : i32
    %c0_i32_0 = arith.constant 0 : i32
    %c0_i32_1 = arith.constant 0 : i32
    return %c0_i32, %c0_i32_0 : i32, i32
  }
  func.func @transform_5(%arg0: i32) -> (i32, i32) {
    %c0_i32 = arith.constant 0 : i32
    %c0_i32_0 = arith.constant 0 : i32
    return %c0_i32, %arg0 : i32, i32
  }
}

</mosaic_0001>

<bundles_post_ra>
// kernel: dnn_forward.1
= control target key start
LH: loop header
LB: loop body
LE: loop exit
PB: predicated region body
PF: predicated region fallthrough
CT: control target
= control target key end

     0   :  { %s1668_s0 = inlined_call_operand.vmem [shape: f32[600,25], index: 0, kind: input, shape index: {}]   ;;  %s1669_s1 = inlined_call_operand.vmem [shape: f32[25,16], index: 1, kind: input, shape index: {}]   ;;  %s1670_s2 = inlined_call_operand.vmem [shape: f32[1,16], index: 2, kind: input, shape index: {}]   ;;  %s1671_s3 = inlined_call_operand.vmem [shape: f32[1,16], index: 3, kind: input, shape index: {}]   ;;  %s1672_s4 = inlined_call_operand.<no memory space> [shape: f32[1,1], index: 4, kind: input, shape index: {}]   ;;  %s1673_s5 = inlined_call_operand.hbm [shape: f32[1,600], index: 5, kind: output, shape index: {}]  }
   0x1   :  { %v10_v0 = vstv %s1672_s4 }
   0x2   :  { %11 = vst [vmem:[#allocation2] sm:$0x1] %v10_v0 }
   0x3   :  { %12 = vsyncpa [#allocation4], 0 }
   0x4   :  { %14 = vsyncpa [#allocation4 + $0x1], 0  ;;  %s1348_s20 = smov 0   ;;  %s1350_s21 = smov 0  }
   0x5   :  { %s1352_s22 = smov 0   ;;  %s1354_s23 = smov 0  }
   0x6 LB: > { %s1369_s4 = sadd.s32 4294967295, %s1310_s23   ;;  %s1001_s24 = sadd.s32 4294967294, %s1310_s23   ;;  %s1310_s23 = sphi %s1354_s23, %s1679_s23   ;;  %s1306_s22 = sphi %s1352_s22, %s1678_s22   ;;  %s1302_s21 = sphi %s1350_s21, %s1677_s21   ;;  %s1298_s20 = sphi %s1348_s20, %s1676_s20  }
   0x7   : > { %s1373_s25 = sadd.s32 1, %s1310_s23   ;;  %s137_s26 = sadd.s32 1, %s1306_s22 }
   0x8   : > { %s134_s27 = ssub.s32 %s1310_s23, %s1373_s25  ;;  %p147_p0 = scmp.ne.s32.totalorder %s1306_s22, %s1302_s21 }
   0x9   : > { %p135_p1 = scmp.eq.s32.totalorder %s134_s27, 0  ;;  %p148_p2 = scmp.eq.s32.totalorder %s1369_s4, 2 }
   0xa   : > { %p153_p3 = scmp.ne.s32.totalorder %s1302_s21, %s1298_s20  ;;  %p154_p4 = scmp.eq.s32.totalorder %s1001_s24, 2 }
   0xb   : > { %s1384_s28 = scalar_select %p135_p1, %s1306_s22, %s137_s26  }
   0xc   : > { %p1386_p5 = por %p148_p2, %p147_p0  ;;  %p1390_p6 = por %p154_p4, %p153_p3 }
   0xd   : > { %p1004_p7 = scmp.ge.s32.totalorder %s1310_s23, 1  ;;  %p201_p8 = scmp.lt.s32.totalorder %s1310_s23, 4 }
   0xf   : > { %p202_p9 = pnand %p1004_p7, %p201_p8 }
  0x10   : > { %s1403_s10 = sshll.u32 (!%p202_p9), %s1369_s4, 5  ;;  %s230_s7 = sand.u32 (!%p202_p9), 1, %s1302_s21  }
  0x11   : > { %205 = sbr.rel (%p202_p9) target bundleno = 583 (0x247), region = 40  ;;  %p238_p10 = scmp.lt.s32.totalorder (!%p202_p9), %s1403_s10, 74 }
  0x12   : > { %s1005_s8 = sshll.u32 (!%p202_p9), %s230_s7, 1  ;;  %s1621_s11 = scalar_lea.sflag (!%p202_p9), [#allocation4], %s230_s7 }
  0x13   : > { %s232_s9 = scalar_lea.vmem (!%p202_p9), [#allocation3], %s1005_s8 }
  0x16   : > { %v287_v1 = vld [vmem:[%s1669_s1 + $0x18] sm:$0x1]  ;;  %vm392_vm0 = vcmask 1040384   ;;  %v286_v2 = vld [vmem:[%s1669_s1 + $0x10] sm:$0xff]  ;;  %v285_v3 = vld [vmem:[%s1669_s1 + $0x8] sm:$0xff]  ;;  %s239_s13 = scalar_select %p238_p10, %s1403_s10, 74 }
  0x17   : > { %1153 = vmatprep.subr.msk.mxu0 %vm392_vm0, %v287_v1  ;;  %v284_v4 = vld [vmem:[%s1669_s1] sm:$0xff]  ;;  %vm295_vm1 = vcmask 203776   ;;  %vm728_vm2 = vcmask 130048   ;;  %v1312_v41 = vmov 0   ;;  %s1076_s12 = sshll.u32 (%p1386_p5), %s1369_s4, 1 }
  0x18   : > { %1154 = vmatpush3.msk.msra.mxu0 %vm392_vm0, %v287_v1  ;;  %s1007_s16 = sshll.u32 %s239_s13, 3  ;;  %v1485_v37 = vld [vmem:[%s1671_s3] sm:$0x1]  ;;  %1249 = vset.pattern.permute.xlu0 %v1312_v41  ;;  %s931_s13 = ssub.s32 (%p1386_p5), 5, %s1076_s12 }
  0x19   : > { %1155 = vmatprep.subr.mxu0 %v286_v2  ;;  %s1416_s19 = scalar_lea.vmem %s1668_s0, %s1007_s16  ;;  %1151 = vmatprep.mubr.msk.f32.mxu1 %vm728_vm2, %v1485_v37  ;;  %v718_v40 = vld [vmem:[#allocation2] sm:$0x1]  ;;  %p932_p11 = scmp.lt.s32.totalorder (%p1386_p5), %s931_s13, 2 }
  0x1a   : > { %1156 = vmatpush3.msra.mxu0 %v286_v2  ;;  %v252_v5 = vld [vmem:[%s1416_s19] sm:$0xff]  ;;  %v253_v6 = vld [vmem:[%s1416_s19 + $0x8] sm:$0xff]  ;;  %v254_v7 = vld [vmem:[%s1416_s19 + $0x10] sm:$0xff]  ;;  %721 = vperm.xlu0 %1249, %v718_v40  }
  0x1b   : > { %1157 = vmatprep.subr.mxu0 %v285_v3  ;;  %1161 = vmatprep.mubr.msk.f32.mxu0 %vm295_vm1, %v252_v5  ;;  %v255_v8 = vld [vmem:[%s1416_s19 + $0x18] sm:$0xff]  ;;  %v256_v9 = vld [vmem:[%s1416_s19 + $0x20] sm:$0xff]  ;;  %v257_v10 = vld [vmem:[%s1416_s19 + $0x28] sm:$0xff] }
  0x1c   : > { %1158 = vmatpush3.msra.mxu0 %v285_v3  ;;  %v258_v11 = vld [vmem:[%s1416_s19 + $0x30] sm:$0xff]  ;;  %v259_v12 = vld [vmem:[%s1416_s19 + $0x38] sm:$0xff]  ;;  %v260_v13 = vld [vmem:[%s1416_s19 + $0x40] sm:$0xff] }
  0x1d   : > { %1159 = vmatprep.subr.mxu0 %v284_v4  ;;  %v261_v14 = vld [vmem:[%s1416_s19 + $0x48] sm:$0xff]  ;;  %v262_v15 = vld [vmem:[%s1416_s19 + $0x50] sm:$0xff]  ;;  %v263_v16 = vld [vmem:[%s1416_s19 + $0x58] sm:$0xff] }
  0x1e   : > { %1160 = vmatpush3.msra.mxu0 %v284_v4  ;;  %v264_v17 = vld [vmem:[%s1416_s19 + $0x60] sm:$0xff]  ;;  %v265_v18 = vld [vmem:[%s1416_s19 + $0x68] sm:$0xff]  ;;  %v266_v19 = vld [vmem:[%s1416_s19 + $0x70] sm:$0xff] }
  0x1f   : > { %1162 = vmatmul.mubr.msk.f32.vlgmr.msra.gmra.mxu0 %vm295_vm1, %v253_v6  ;;  %v267_v20 = vld [vmem:[%s1416_s19 + $0x78] sm:$0xff]  ;;  %v268_v21 = vld [vmem:[%s1416_s19 + $0x80] sm:$0xff]  ;;  %v269_v22 = vld [vmem:[%s1416_s19 + $0x88] sm:$0xff] }
  0x20   : > { %1164 = vmatprep.mubr.msk.f32.mxu0 %vm295_vm1, %v254_v7  ;;  %v270_v23 = vld [vmem:[%s1416_s19 + $0x90] sm:$0xff]  ;;  %v271_v24 = vld [vmem:[%s1416_s19 + $0x98] sm:$0xff]  ;;  %v272_v25 = vld [vmem:[%s1416_s19 + $0xa0] sm:$0xff] }
  0x21   : > { %v273_v26 = vld [vmem:[%s1416_s19 + $0xa8] sm:$0xff]  ;;  %v274_v27 = vld [vmem:[%s1416_s19 + $0xb0] sm:$0xff]  ;;  %v275_v28 = vld [vmem:[%s1416_s19 + $0xb8] sm:$0xff] }
  0x22   : > { %v276_v29 = vld [vmem:[%s1416_s19 + $0xc0] sm:$0xff]  ;;  %v277_v30 = vld [vmem:[%s1416_s19 + $0xc8] sm:$0xff]  ;;  %v278_v31 = vld [vmem:[%s1416_s19 + $0xd0] sm:$0xff] }
  0x23   : > { %1165 = vmatmul.mubr.msk.f32.gmra.mxu0 %vm295_vm1, %v255_v8  ;;  %v279_v32 = vld [vmem:[%s1416_s19 + $0xd8] sm:$0xff]  ;;  %v280_v33 = vld [vmem:[%s1416_s19 + $0xe0] sm:$0xff]  ;;  %v281_v34 = vld [vmem:[%s1416_s19 + $0xe8] sm:$0xff] }
  0x24   : > { %1167 = vmatprep.mubr.msk.f32.mxu0 %vm295_vm1, %v256_v9  ;;  %v282_v35 = vld [vmem:[%s1416_s19 + $0xf0] sm:$0xff]  ;;  %v283_v36 = vld [vmem:[%s1416_s19 + $0xf8] sm:$0xff]  ;;  %v1532_v5 = vld [vmem:[%s1670_s2] ss:$0 sm:$0xff] }
  0x27   : > { %1168 = vmatmul.mubr.msk.f32.gmra.mxu0 %vm295_vm1, %v257_v10 }
  0x28   : > { %1170 = vmatprep.mubr.msk.f32.mxu0 %vm295_vm1, %v258_v11 }
  0x2b   : > { %1171 = vmatmul.mubr.msk.f32.gmra.mxu0 %vm295_vm1, %v259_v12 }
  0x2c   : > { %1173 = vmatprep.mubr.msk.f32.mxu0 %vm295_vm1, %v260_v13 }
  0x2f   : > { %1174 = vmatmul.mubr.msk.f32.gmra.mxu0 %vm295_vm1, %v261_v14 }
  0x30   : > { %1176 = vmatprep.mubr.msk.f32.mxu0 %vm295_vm1, %v262_v15 }
  0x33   : > { %1177 = vmatmul.mubr.msk.f32.gmra.mxu0 %vm295_vm1, %v263_v16 }
  0x34   : > { %1179 = vmatprep.mubr.msk.f32.mxu0 %vm295_vm1, %v264_v17 }
  0x37   : > { %1180 = vmatmul.mubr.msk.f32.gmra.mxu0 %vm295_vm1, %v265_v18 }
  0x38   : > { %1182 = vmatprep.mubr.msk.f32.mxu0 %vm295_vm1, %v266_v19 }
  0x3b   : > { %1183 = vmatmul.mubr.msk.f32.gmra.mxu0 %vm295_vm1, %v267_v20 }
  0x3c   : > { %1185 = vmatprep.mubr.msk.f32.mxu0 %vm295_vm1, %v268_v21 }
  0x3f   : > { %1186 = vmatmul.mubr.msk.f32.gmra.mxu0 %vm295_vm1, %v269_v22 }
  0x40   : > { %1188 = vmatprep.mubr.msk.f32.mxu0 %vm295_vm1, %v270_v23 }
  0x43   : > { %1189 = vmatmul.mubr.msk.f32.gmra.mxu0 %vm295_vm1, %v271_v24 }
  0x44   : > { %1191 = vmatprep.mubr.msk.f32.mxu0 %vm295_vm1, %v272_v25 }
  0x47   : > { %1192 = vmatmul.mubr.msk.f32.gmra.mxu0 %vm295_vm1, %v273_v26 }
  0x48   : > { %1194 = vmatprep.mubr.msk.f32.mxu0 %vm295_vm1, %v274_v27 }
  0x4b   : > { %1195 = vmatmul.mubr.msk.f32.gmra.mxu0 %vm295_vm1, %v275_v28 }
  0x4c   : > { %1197 = vmatprep.mubr.msk.f32.mxu0 %vm295_vm1, %v276_v29 }
  0x4f   : > { %1198 = vmatmul.mubr.msk.f32.gmra.mxu0 %vm295_vm1, %v277_v30 }
  0x50   : > { %1200 = vmatprep.mubr.msk.f32.mxu0 %vm295_vm1, %v278_v31 }
  0x53   : > { %1201 = vmatmul.mubr.msk.f32.gmra.mxu0 %vm295_vm1, %v279_v32 }
  0x54   : > { %1203 = vmatprep.mubr.msk.f32.mxu0 %vm295_vm1, %v280_v33 }
  0x57   : > { %1204 = vmatmul.mubr.msk.f32.gmra.mxu0 %vm295_vm1, %v281_v34 }
  0x58   : > { %1206 = vmatprep.mubr.msk.f32.mxu0 %vm295_vm1, %v282_v35 }
  0x5b   : > { %1207 = vmatmul.mubr.msk.f32.gmra.mxu0 %vm295_vm1, %v283_v36 }
  0xdf   : > { %v1487_v38 = vpop.f32.mrf.mxu0 }
  0xe1   : > { %v1491_v39 = vpop.f32.mrf.mxu0 }
  0xe3   : > { %v1493_v42 = vpop.f32.mrf.mxu0 }
  0xe5   : > { %v1495_v43 = vpop.f32.mrf.mxu0 }
  0xe7   : > { %v1497_v44 = vpop.f32.mrf.mxu0 }
  0xe9   : > { %v1499_v45 = vpop.f32.mrf.mxu0 }
  0xeb   : > { %v1501_v46 = vpop.f32.mrf.mxu0 }
  0xed   : > { %v1503_v47 = vpop.f32.mrf.mxu0 }
  0xef   : > { %v1505_v48 = vpop.f32.mrf.mxu0 }
  0xf1   : > { %v1507_v49 = vpop.f32.mrf.mxu0 }
  0xf3   : > { %v1178_v50 = vpop.f32.mrf.mxu0 }
  0xf4   : > { %v518_v30 = vadd.f32 %v1178_v50, %v1532_v5 }
  0xf5   : > { %v1509_v51 = vpop.f32.mrf.mxu0 }
  0xf6   : > { %v664_v36 = vmul.f32 0.01, %v518_v30  ;;  %v513_v40 = vadd.f32 %v1532_v5, %v1509_v51  ;;  %vm632_vm12 = vcmp.ge.f32.partialorder %v518_v30, 0.0 }
  0xf7   : > { %v1181_v52 = vpop.f32.mrf.mxu0 }
  0xf8   : > { %v528_v18 = vadd.f32 %v1181_v52, %v1532_v5  ;;  %vm631_vm14 = vcmp.ge.f32.partialorder %v513_v40, 0.0 }
  0xf9   : > { %v522_v53 = vpop.f32.mrf.mxu0 }
  0xfa   : > { %v666_v24 = vmul.f32 0.01, %v528_v18  ;;  %v523_v25 = vadd.f32 %v1532_v5, %v522_v53  ;;  %vm634_vm8 = vcmp.ge.f32.partialorder %v528_v18, 0.0 }
  0xfb   : > { %v1184_v54 = vpop.f32.mrf.mxu0 }
  0xfc   : > { %v538_v6 = vadd.f32 %v1184_v54, %v1532_v5  ;;  %v665_v31 = vmul.f32 0.01, %v523_v25  ;;  %v698_v32 = vsel %vm634_vm8, %v528_v18, %v666_v24  ;;  %vm633_vm10 = vcmp.ge.f32.partialorder %v523_v25, 0.0 }
  0xfd   : > { %v532_v55 = vpop.f32.mrf.mxu0  ;;  %v508_v54 = vadd.f32 %v1505_v48, %v1532_v5 }
  0xfe   : > { %v668_v10 = vmul.f32 0.01, %v538_v6  ;;  %v533_v11 = vadd.f32 %v1532_v5, %v532_v55  ;;  %vm636_vm3 = vcmp.ge.f32.partialorder %v538_v6, 0.0  ;;  %v697_v41 = vsel %vm633_vm10, %v523_v25, %v665_v31 }
  0xff   : > { %v1511_v56 = vpop.f32.mrf.mxu0  ;;  %v663_v55 = vmul.f32 0.01, %v513_v40  ;;  %vm630_vm0 = vcmp.ge.f32.partialorder %v508_v54, 0.0 }
 0x100   : > { %v667_v19 = vmul.f32 0.01, %v533_v11  ;;  %v700_v20 = vsel %vm636_vm3, %v538_v6, %v668_v10  ;;  %vm635_vm6 = vcmp.ge.f32.partialorder %v533_v11, 0.0  ;;  %v503_v6 = vadd.f32 %v1532_v5, %v1507_v49 }
 0x101   : > { %v1513_v57 = vpop.f32.mrf.mxu0 }
 0x102   : > { %v699_v26 = vsel %vm635_vm6, %v533_v11, %v667_v19  ;;  %v661_v10 = vmul.f32 0.01, %v503_v6  ;;  %vm629_vm3 = vcmp.ge.f32.partialorder %v503_v6, 0.0 }
 0x103   : > { %v1515_v58 = vpop.f32.mrf.mxu0 }
 0x105   : > { %v1517_v59 = vpop.f32.mrf.mxu0 }
 0x107   : > { %v1519_v60 = vpop.f32.mrf.mxu0 }
 0x109   : > { %v1521_v61 = vpop.f32.mrf.mxu0 }
 0x10b   : > { %v1523_v62 = vpop.f32.mrf.mxu0 }
 0x10c   : > { %v578_v48 = vadd.f32 %v1523_v62, %v1532_v5 }
 0x10d   : > { %v1525_v63 = vpop.f32.mrf.mxu0 }
 0x10e   : > { %v573_v49 = vadd.f32 %v1532_v5, %v1525_v63  ;;  %v488_v63 = vadd.f32 %v1497_v44, %v1532_v5  ;;  %v558_v44 = vadd.f32 %v1515_v58, %v1532_v5 }
 0x10f   : > { %v1199_v0 = vpop.f32.mrf.mxu0 }
 0x110   : > { %v588_v50 = vadd.f32 %v1199_v0, %v1532_v5  ;;  %vm643_vm6 = vcmp.ge.f32.partialorder %v573_v49, 0.0 }
 0x111   : > { %v1527_v1 = vpop.f32.mrf.mxu0 }
 0x112   : > { %v583_v51 = vadd.f32 %v1532_v5, %v1527_v1  ;;  %vm646_vm15 = vcmp.ge.f32.partialorder %v588_v50, 0.0  ;;  %v498_v1 = vadd.f32 %v1501_v46, %v1532_v5  ;;  %v568_v46 = vadd.f32 %v1519_v60, %v1532_v5 }
 0x113   : > { %v1202_v2 = vpop.f32.mrf.mxu0 }
 0x114   : > { %v598_v27 = vadd.f32 %v1202_v2, %v1532_v5  ;;  %v696_v2 = vsel %vm632_vm12, %v518_v30, %v664_v36  ;;  %vm645_vm1 = vcmp.ge.f32.partialorder %v583_v51, 0.0  ;;  %vm642_vm8 = vcmp.ge.f32.partialorder %v568_v46, 0.0 }
 0x115   : > { %v592_v3 = vpop.f32.mrf.mxu0  ;;  %vm640_vm12 = vcmp.ge.f32.partialorder %v558_v44, 0.0  ;;  %v473_v30 = vadd.f32 %v1532_v5, %v1495_v43  ;;  %v543_v43 = vadd.f32 %v1532_v5, %v1513_v57 }
 0x116   : > { %v680_v33 = vmul.f32 0.01, %v598_v27  ;;  %v593_v34 = vadd.f32 %v1532_v5, %v592_v3  ;;  %vm648_vm11 = vcmp.ge.f32.partialorder %v598_v27, 0.0  ;;  %v678_v3 = vmul.f32 0.01, %v588_v50 }
 0x117   : > { %v1205_v4 = vpop.f32.mrf.mxu0 }
 0x118   : > { %v608_v13 = vadd.f32 %v1205_v4, %v1532_v5  ;;  %v679_v52 = vmul.f32 0.01, %v593_v34  ;;  %v712_v53 = vsel %vm648_vm11, %v598_v27, %v680_v33  ;;  %vm647_vm13 = vcmp.ge.f32.partialorder %v593_v34, 0.0 }
 0x119   : > { %v602_v7 = vpop.f32.mrf.mxu0  ;;  %v662_v4 = vmul.f32 0.01, %v508_v54 }
 0x11a   : > { %v682_v21 = vmul.f32 0.01, %v608_v13  ;;  %v603_v22 = vadd.f32 %v1532_v5, %v602_v7  ;;  %vm650_vm7 = vcmp.ge.f32.partialorder %v608_v13, 0.0  ;;  %v711_v0 = vsel %vm647_vm13, %v593_v34, %v679_v52 }
 0x11b   : > { %v1208_v8 = vpop.f32.mrf.mxu0  ;;  %v695_v7 = vsel %vm631_vm14, %v513_v40, %v663_v55  ;;  %v694_v11 = vsel %vm630_vm0, %v508_v54, %v662_v4  ;;  %v655_v34 = vmul.f32 0.01, %v473_v30 }
 0x11c   : > { %v618_v9 = vadd.f32 %v1208_v8, %v1532_v5  ;;  %v681_v28 = vmul.f32 0.01, %v603_v22  ;;  %v714_v29 = vsel %vm650_vm7, %v608_v13, %v682_v21  ;;  %vm649_vm9 = vcmp.ge.f32.partialorder %v603_v22, 0.0 }
 0x11d   : > { %v612_v12 = vpop.f32.mrf.mxu0  ;;  %v677_v8 = vmul.f32 0.01, %v583_v51  ;;  %v660_v13 = vmul.f32 0.01, %v498_v1  ;;  %v658_v21 = vmul.f32 0.01, %v488_v63 }
 0x11e   : > { %v613_v14 = vadd.f32 %v1532_v5, %v612_v12  ;;  %vm652_vm4 = vcmp.ge.f32.partialorder %v618_v9, 0.0  ;;  %v684_v15 = vmul.f32 0.01, %v618_v9  ;;  %v713_v35 = vsel %vm649_vm9, %v603_v22, %v681_v28 }
 0x11f   : > { %v676_v12 = vmul.f32 0.01, %v578_v48  ;;  %v709_v62 = vsel %vm645_vm1, %v583_v51, %v677_v8  ;;  %v483_v22 = vadd.f32 %v1532_v5, %v1499_v45  ;;  %vm626_vm9 = vcmp.ge.f32.partialorder %v488_v63, 0.0 }
 0x120   : > { %vm651_vm5 = vcmp.ge.f32.partialorder %v613_v14, 0.0  ;;  %v683_v16 = vmul.f32 0.01, %v613_v14  ;;  %v716_v17 = vsel %vm652_vm4, %v618_v9, %v684_v15  ;;  %v710_v9 = vsel %vm646_vm15, %v588_v50, %v678_v3 }
 0x121   : > { %1119 = vmatprep.subr.msk.mxu1 %vm728_vm2, %v716_v17  ;;  %vm644_vm4 = vcmp.ge.f32.partialorder %v578_v48, 0.0  ;;  %v693_v15 = vsel %vm629_vm3, %v503_v6, %v661_v10  ;;  %v690_v27 = vsel %vm626_vm9, %v488_v63, %v658_v21  ;;  %vm625_vm11 = vcmp.ge.f32.partialorder %v483_v22, 0.0 }
 0x122   : > { %1120 = vmatpush3.xpose.msk.msra.mxu1 %vm728_vm2, %v700_v20  ;;  %v715_v23 = vsel %vm651_vm5, %v613_v14, %v683_v16  ;;  %v493_v14 = vadd.f32 %v1532_v5, %v1503_v47  ;;  %vm628_vm5 = vcmp.ge.f32.partialorder %v498_v1, 0.0  ;;  %v675_v16 = vmul.f32 0.01, %v573_v49 }
 0x123   : > { %1121 = vmatprep.subr.msk.mxu1 %vm728_vm2, %v715_v23  ;;  %v708_v17 = vsel %vm644_vm4, %v578_v48, %v676_v12  ;;  %v692_v19 = vsel %vm628_vm5, %v498_v1, %v660_v13  ;;  %v674_v20 = vmul.f32 0.01, %v568_v46  ;;  %v563_v47 = vadd.f32 %v1532_v5, %v1521_v61 }
 0x124   : > { %v659_v18 = vmul.f32 0.01, %v493_v14  ;;  %vm627_vm7 = vcmp.ge.f32.partialorder %v493_v14, 0.0  ;;  %v707_v60 = vsel %vm643_vm6, %v573_v49, %v675_v16  ;;  %v478_v61 = vadd.f32 %v1493_v42, %v1532_v5 }
 0x125   : > { %v673_v24 = vmul.f32 0.01, %v563_v47  ;;  %v706_v25 = vsel %vm642_vm8, %v568_v46, %v674_v20  ;;  %vm641_vm10 = vcmp.ge.f32.partialorder %v563_v47, 0.0  ;;  %v672_v28 = vmul.f32 0.01, %v558_v44 }
 0x126   : > { %1122 = vmatpush3.xpose.msk.msra.mxu1 %vm728_vm2, %v699_v26  ;;  %v691_v23 = vsel %vm627_vm7, %v493_v14, %v659_v18  ;;  %v657_v26 = vmul.f32 0.01, %v483_v22  ;;  %v553_v45 = vadd.f32 %v1532_v5, %v1517_v59  ;;  %vm624_vm13 = vcmp.ge.f32.partialorder %v478_v61, 0.0 }
 0x127   : > { %1123 = vmatprep.subr.msk.mxu1 %vm728_vm2, %v714_v29  ;;  %v705_v58 = vsel %vm641_vm10, %v563_v47, %v673_v24  ;;  %v656_v29 = vmul.f32 0.01, %v478_v61  ;;  %v548_v42 = vadd.f32 %v1511_v56, %v1532_v5  ;;  %v704_v33 = vsel %vm640_vm12, %v558_v44, %v672_v28 }
 0x128   : > { %v689_v31 = vsel %vm625_vm11, %v483_v22, %v657_v26  ;;  %vm639_vm14 = vcmp.ge.f32.partialorder %v553_v45, 0.0  ;;  %v468_v59 = vadd.f32 %v1487_v38, %v1532_v5  ;;  %vm623_vm15 = vcmp.ge.f32.partialorder %v473_v30, 0.0 }
 0x129   : > { %v670_v36 = vmul.f32 0.01, %v548_v42  ;;  %vm638_vm0 = vcmp.ge.f32.partialorder %v548_v42, 0.0  ;;  %v687_v50 = vsel %vm623_vm15, %v473_v30, %v655_v34  ;;  %v669_v38 = vmul.f32 0.01, %v543_v43 }
 0x12a   : > { %1124 = vmatpush3.xpose.msk.msra.mxu1 %vm728_vm2, %v698_v32  ;;  %v671_v32 = vmul.f32 0.01, %v553_v45  ;;  %v654_v40 = vmul.f32 0.01, %v468_v59  ;;  %vm622_vm1 = vcmp.ge.f32.partialorder %v468_v59, 0.0  ;;  %vm637_vm3 = vcmp.ge.f32.partialorder %v543_v43, 0.0 }
 0x12b   : > { %1125 = vmatprep.subr.msk.mxu1 %vm728_vm2, %v713_v35  ;;  %v688_v35 = vsel %vm624_vm13, %v478_v61, %v656_v29  ;;  %v702_v52 = vsel %vm638_vm0, %v548_v42, %v670_v36  ;;  %v701_v54 = vsel %vm637_vm3, %v543_v43, %v669_v38  ;;  %v1313_v3 = vmov 1966171168  }
 0x12c   : > { %v703_v56 = vsel %vm639_vm14, %v553_v45, %v671_v32  ;;  %v903_v51 = vunpack.c.l.s4 %v1313_v3 }
 0x12e   : > { %1126 = vmatpush3.xpose.msk.msra.mxu1 %vm728_vm2, %v697_v41  ;;  %v463_v41 = vadd.f32 %v1532_v5, %v1491_v39  ;;  %v724_v39 = vlaneseq  ;;  %v904_v6 = vunpack.c.0.s8 %v903_v51 }
 0x12f   : > { %1127 = vmatprep.subr.msk.mxu1 %vm728_vm2, %v712_v53  ;;  %v686_v53 = vsel %vm622_vm1, %v468_v59, %v654_v40 }
 0x130   : > { %v653_v57 = vmul.f32 0.01, %v463_v41  ;;  %vm621_vm4 = vcmp.ge.f32.partialorder %v463_v41, 0.0  ;;  %v725_v5 = vshrl.u32 %v724_v39, 7  ;;  %vm919_vm5 = vcmp.lt.s32.totalorder %v724_v39, 256 }
 0x132   : > { %1128 = vmatpush3.xpose.msk.msra.mxu1 %vm728_vm2, %v696_v2  ;;  %v685_v55 = vsel %vm621_vm4, %v463_v41, %v653_v57  ;;  %v726_v2 = vsub.s32 0, %v725_v5  ;;  %v907_v1 = vsub.s32 %v904_v6, %v725_v5 }
 0x133   : > { %1129 = vmatprep.subr.msk.mxu1 %vm728_vm2, %v711_v0  ;;  %v722_v0 = vpop.permute.xlu0 %721 }
 0x134   : > { %v727_v4 = vrot.slane %v722_v0, %v726_v2 }
 0x136   : > { %1130 = vmatpush3.xpose.msk.msra.mxu1 %vm728_vm2, %v695_v7 }
 0x137   : > { %1131 = vmatprep.subr.msk.mxu1 %vm728_vm2, %v710_v9 }
 0x13a   : > { %1132 = vmatpush3.xpose.msk.msra.mxu1 %vm728_vm2, %v694_v11 }
 0x13b   : > { %1133 = vmatprep.subr.msk.mxu1 %vm728_vm2, %v709_v62 }
 0x13e   : > { %1134 = vmatpush3.xpose.msk.msra.mxu1 %vm728_vm2, %v693_v15 }
 0x13f   : > { %1135 = vmatprep.subr.msk.mxu1 %vm728_vm2, %v708_v17 }
 0x142   : > { %1136 = vmatpush3.xpose.msk.msra.mxu1 %vm728_vm2, %v692_v19 }
 0x143   : > { %1137 = vmatprep.subr.msk.mxu1 %vm728_vm2, %v707_v60 }
 0x146   : > { %1138 = vmatpush3.xpose.msk.msra.mxu1 %vm728_vm2, %v691_v23 }
 0x147   : > { %1139 = vmatprep.subr.msk.mxu1 %vm728_vm2, %v706_v25 }
 0x14a   : > { %1140 = vmatpush3.xpose.msk.msra.mxu1 %vm728_vm2, %v690_v27 }
 0x14b   : > { %1141 = vmatprep.subr.msk.mxu1 %vm728_vm2, %v705_v58 }
 0x14e   : > { %1142 = vmatpush3.xpose.msk.msra.mxu1 %vm728_vm2, %v689_v31 }
 0x14f   : > { %1143 = vmatprep.subr.msk.mxu1 %vm728_vm2, %v704_v33 }
 0x152   : > { %1144 = vmatpush3.xpose.msk.msra.mxu1 %vm728_vm2, %v688_v35 }
 0x153   : > { %1145 = vmatprep.subr.msk.mxu1 %vm728_vm2, %v703_v56 }
 0x156   : > { %1146 = vmatpush3.xpose.msk.msra.mxu1 %vm728_vm2, %v687_v50 }
 0x157   : > { %1147 = vmatprep.subr.msk.mxu1 %vm728_vm2, %v702_v52 }
 0x15a   : > { %1148 = vmatpush3.xpose.msk.msra.mxu1 %vm728_vm2, %v686_v53 }
 0x15b   : > { %1149 = vmatprep.subr.msk.mxu1 %vm728_vm2, %v701_v54 }
 0x15e   : > { %1150 = vmatpush3.xpose.msk.msra.mxu1 %vm728_vm2, %v685_v55 }
 0x161   : > { %1152 = vmatmul.mubr.msk.f32.vlgmr.msra.gmra.mxu1 %vm728_vm2, %v1485_v37 }
 0x221   : > { %v894_v7 = vpop.f32.mrf.mxu1 }
 0x222   : > { %v895_v8 = vadd.f32 %v894_v7, %v727_v4 }
 0x223   : > { %v896_v48 = vpop.f32.mrf.mxu1 }
 0x224   : > { %v897_v9 = vadd.f32 %v896_v48, %v727_v4 }
 0x226   : > { %v901_v10 = vcombine.low %v895_v8, %v897_v9 }
 0x228   : > { %v908_v11 = vrot.slane %v901_v10, %v907_v1  ;;  %929 = sbr.rel (!%p1386_p5) target bundleno = 583 (0x247), region = 44 }
 0x22a   : > { %v915_v12 = vrot.slane %v908_v11, %v907_v1 }
 0x22c   : > { %921 = vst.msk [vmem:[%s232_s9] sm:$0x3] %vm919_vm5, %v915_v12 }
 0x22d   : > { %s1681_s13 = smov (!%p932_p11, %s931_s13), 2 }
 0x22e   : > { %s1626_s14 = sshll.u32 %s1681_s13, 4 }
 0x22f   : > { %s936_s15 = ssub.s32 32, %s1626_s14 }
 0x230   : > { %937 = vsyncadd %s1621_s11, %s936_s15  ;;  %p1078_p12 = scmp.ne.s32.totalorder %s1626_s14, 0  ;;  %s940_s29 = scalar_lea.hbm %s1673_s5, %s1403_s10 }
 0x231   : > { %s942_s18 = sshll.u32 %s232_s9, 4  ;;  %s1314_s19 = smov [#allocation3]   ;;  %s943_s18 = int_to_ptr.vmem [resolvable:$true] %s942_s18 }
 0x232   : > { %s1250_s4 = scalar_lea.vmem %s943_s18, %s1626_s14  ;;  %s1254_s24 = sshll.u32 %s1314_s19, 4  ;;  %s1255_s24 = int_to_ptr.vmem [resolvable:$false] %s1254_s24 }
 0x233   : > { %p1251_p13 = scmp.ne.s32.totalorder %s943_s18, %s1250_s4  ;;  %s1256_s26 = scalar_lea.vmem %s1255_s24, 64 }
 0x234   : > { %p1257_p2 = scmp.lt.s32.totalorder %s943_s18, %s1255_s24  ;;  %p1258_p3 = scmp.lt.s32.totalorder %s1256_s26, %s1250_s4 }
 0x235   : > { %p1252_p0 = pnand %p1251_p13, %p1078_p12 }
 0x236   : > { %p1259_p4 = por %p1258_p3, %p1257_p2 }
 0x237   : > { %p1253_p1 = pneg %p1252_p0 }
 0x239   : > { %p1260_p5 = pnand %p1259_p4, %p1253_p1 }
 0x23b   : > { %1263 = shalt.err (!%p1260_p5)
}
 0x23c   : > { %s1264_s27 = scalar_lea.hbm %s940_s29, %s1626_s14  ;;  %s1268_s7 = scalar_lea.hbm %s1673_s5, 80 }
 0x23d   : > { %p1265_p7 = scmp.ne.s32.totalorder %s940_s29, %s1264_s27  ;;  %p1269_p10 = scmp.lt.s32.totalorder %s940_s29, %s1673_s5 }
 0x23e   : > { %p1270_p11 = scmp.lt.s32.totalorder %s1268_s7, %s1264_s27 }
 0x23f   : > { %p1266_p8 = pnand %p1265_p7, %p1078_p12 }
 0x240   : > { %p1271_p13 = por %p1270_p11, %p1269_p10 }
 0x241   : > { %p1267_p9 = pneg %p1266_p8 }
 0x243   : > { %p1272_p0 = pnand %p1271_p13, %p1267_p9 }
 0x245   : > { %1275 = shalt.err (!%p1272_p0)
}
 0x246   : > { %945 = dma.vmem_to_hbm [thread:$0]  (%p1078_p12), %s943_s18, %s1626_s14, %s940_s29, %s1621_s11  }
 0x247 PF: > { %p1214_p1 = scmp.ge.s32.totalorder %s1310_s23, 2  ;;  %s954_s12 = sand.u32 1, %s1298_s20  }
 0x248   : > { %s955_s13 = scalar_lea.sflag [#allocation4], %s954_s12 }
 0x249   : > { %p1211_p2 = pnand %p1214_p1, %p1390_p6 }
 0x24b   : > { %p1212_p3 = pneg %p1211_p2 }
 0x24d   : > { %1293 = dma.done.wait (%p1212_p3), %s955_s13, 32  }
 0x24e   : > { %1295 = vsyncadd (%p1212_p3), %s955_s13, 4294967264  ;;  %p17_p4 = scmp.ge.s32.totalorder %s1373_s25, 5   ;;  %s1676_s20 = smov %s1302_s21 }
 0x24f   : > { %s1677_s21 = smov %s1306_s22  ;;  %s1678_s22 = smov %s1384_s28 }
 0x250   : > { %s1679_s23 = smov %s1373_s25  ;;  %19 = sbr.rel (!%p17_p4) target bundleno = 6 (0x6), region = 75 }
 0x255   :  { %960 = vsyncpa [#allocation4], 1 }
 0x256   :  { %962 = vsyncpa [#allocation4 + $0x1], 1 }

</bundles_post_ra>
